<compile_context>
chip_gen: v7x
topology: tpu7x:2x2x1
jax: 0.10.0
libtpu: 0.0.40
codegen_flags: <defaults>
</compile_context>

<pallas_src>
import functools

import jax
import jax.numpy as jnp
from jax.experimental import pallas as pl
from jax.experimental.pallas import tpu as pltpu

_VMEM_LIMIT_BYTES = 64 * 1024 * 1024
_STAGE1_OUT_BLOCK_BUDGET = 4 * 1024 * 1024  # target VMEM bytes per stage-1 output block


def _round_up(v, m):
    return ((v + m - 1) // m) * m


def _pick_channel_block(c, gdep, n, l, budget=_STAGE1_OUT_BLOCK_BUDGET):
    """Largest power-of-two-divisor channel block whose lane-padded stage-1 output block
    stays under `budget` bytes (keeps VMEM pressure bounded for large N / C and gives the
    pipeline extra parallel steps)."""
    def padded_bytes(cb):
        return gdep * cb * _round_up(n, 8) * _round_up(l, 128) * 4

    cb = c
    while cb > 1 and cb % 2 == 0 and padded_bytes(cb) > budget:
        cb //= 2
    return cb


def _prop_kernel(x_ref, a_ref, o_ref, *, gdep, alpha, c_blk):
    """Mix-hop propagation for one (batch, channel-group) tile.

    x_ref: (1, c_blk, N, L)        input features for this channel group
    a_ref: (N, N)                  (1 - alpha) * row-normalised (adj + I), VMEM-resident
    o_ref: (1, gdep, c_blk, N, L)  hops 1..gdep (hop 0 == x is not materialised)
    """
    a = a_ref[...]
    for c in range(c_blk):                     # static channel loop: every op stays 2-D
        x_c = x_ref[0, c].astype(jnp.float32)  # (N, L)
        ax = alpha * x_c                       # hoisted out of the hop loop
        h = x_c
        for k in range(gdep):
            h = ax + jnp.dot(a, h, preferred_element_type=jnp.float32)
            o_ref[0, k, c] = h.astype(o_ref.dtype)


def _mlp_kernel(x_ref, h_ref, w0_ref, wr_ref, b_ref, o_ref):
    """1x1 conv over the stacked hops for one batch element (P = N*L lanes).

    x_ref: (1, C, P), h_ref: (1, gdep*C, P), w0_ref: (C_out, C),
    wr_ref: (C_out, gdep*C), b_ref: (C_out, 1), o_ref: (1, C_out, P)
    """
    acc = jnp.dot(w0_ref[...], x_ref[0], preferred_element_type=jnp.float32)
    acc = acc + jnp.dot(wr_ref[...], h_ref[0], preferred_element_type=jnp.float32)
    o_ref[0] = (acc + b_ref[...]).astype(o_ref.dtype)


def _mlp0_kernel(x_ref, w0_ref, b_ref, o_ref):
    """Degenerate gdep == 0 case: ho == x."""
    o_ref[0] = (
        jnp.dot(w0_ref[...], x_ref[0], preferred_element_type=jnp.float32) + b_ref[...]
    ).astype(o_ref.dtype)


def mixprop_forward(x, adj, weight, bias, *, gdep, alpha):
    """x: (B, C_in, N, L); adj: (N, N); weight: (C_out, (gdep+1)*C_in); bias: (C_out,)."""
    B, C, N, L = x.shape
    C_out = weight.shape[0]
    P = N * L

    # Adjacency normalisation (tiny, done once), pre-scaled by (1 - alpha).
    adjn = adj.astype(jnp.float32) + jnp.eye(N, dtype=jnp.float32)
    a_hat = ((1.0 - alpha) * adjn / adjn.sum(axis=1, keepdims=True)).astype(jnp.float32)

    weight = weight.astype(jnp.float32)
    w0, wr = weight[:, :C], weight[:, C:]            # hop-0 vs hops-1..gdep columns
    bias2 = bias.reshape(C_out, 1).astype(jnp.float32)
    x2 = x.reshape(B, C, P)                          # contiguous (free) reshape

    if gdep == 0:
        out2 = pl.pallas_call(
            _mlp0_kernel,
            grid=(B,),
            in_specs=[
                pl.BlockSpec((1, C, P), lambda b: (b, 0, 0)),
                pl.BlockSpec((C_out, C), lambda b: (0, 0)),
                pl.BlockSpec((C_out, 1), lambda b: (0, 0)),
            ],
            out_specs=pl.BlockSpec((1, C_out, P), lambda b: (b, 0, 0)),
            out_shape=jax.ShapeDtypeStruct((B, C_out, P), jnp.float32),
            compiler_params=pltpu.CompilerParams(
                dimension_semantics=("parallel",), vmem_limit_bytes=_VMEM_LIMIT_BYTES),
        )(x2, w0, bias2)
        return out2.reshape(B, C_out, N, L)

    # ---- stage 1: graph propagation; hops emitted channel-major via the out BlockSpec ----
    cb = _pick_channel_block(C, gdep, N, L)
    n_groups = C // cb

    hops = pl.pallas_call(
        functools.partial(_prop_kernel, gdep=gdep, alpha=alpha, c_blk=cb),
        grid=(B, n_groups),
        in_specs=[
            pl.BlockSpec((1, cb, N, L), lambda b, g: (b, g, 0, 0)),
            pl.BlockSpec((N, N), lambda b, g: (0, 0)),
        ],
        out_specs=pl.BlockSpec((1, gdep, cb, N, L), lambda b, g: (b, 0, g, 0, 0)),
        out_shape=jax.ShapeDtypeStruct((B, gdep, C, N, L), x.dtype),
        compiler_params=pltpu.CompilerParams(
            dimension_semantics=("parallel", "parallel"),
            vmem_limit_bytes=_VMEM_LIMIT_BYTES),
    )(x, a_hat)
    hops2 = hops.reshape(B, gdep * C, P)             # contiguous (free) reshape

    # ---- stage 2: 1x1 conv ("linear" module), lane-dense over P = N*L ----
    out2 = pl.pallas_call(
        _mlp_kernel,
        grid=(B,),
        in_specs=[
            pl.BlockSpec((1, C, P), lambda b: (b, 0, 0)),
            pl.BlockSpec((1, gdep * C, P), lambda b: (b, 0, 0)),
            pl.BlockSpec((C_out, C), lambda b: (0, 0)),
            pl.BlockSpec((C_out, gdep * C), lambda b: (0, 0)),
            pl.BlockSpec((C_out, 1), lambda b: (0, 0)),
        ],
        out_specs=pl.BlockSpec((1, C_out, P), lambda b: (b, 0, 0)),
        out_shape=jax.ShapeDtypeStruct((B, C_out, P), jnp.float32),
        compiler_params=pltpu.CompilerParams(
            dimension_semantics=("parallel",), vmem_limit_bytes=_VMEM_LIMIT_BYTES),
    )(x2, hops2, w0, wr, bias2)
    return out2.reshape(B, C_out, N, L)              # contiguous (free) reshape


def mixprop_reference(x, adj, weight, bias, *, gdep, alpha):
    """Pure-JAX reference mirroring the PyTorch forward exactly."""
    N = adj.shape[0]
    adj = adj + jnp.eye(N, dtype=adj.dtype)
    a = adj / adj.sum(axis=1, keepdims=True)
    h = x
    out = [h]
    for _ in range(gdep):
        h = alpha * x + (1.0 - alpha) * jnp.einsum("ncwl,vw->ncvl", h, a)
        out.append(h)
    ho = jnp.concatenate(out, axis=1)
    return jnp.einsum("bkvl,ok->bovl", ho, weight) + bias[None, :, None, None]


if __name__ == "__main__":
    key = jax.random.PRNGKey(0)
    B, C_in, N, L = 2, 4, 16, 8
    gdep, alpha, C_out = 2, 0.05, 8

    k1, k2, k3, k4 = jax.random.split(key, 4)
    x = jax.random.normal(k1, (B, C_in, N, L), dtype=jnp.float32)
    adj = jax.random.uniform(k2, (N, N), dtype=jnp.float32)
    # Conv2d((gdep+1)*C_in, C_out, kernel=(1,1)) -> weight (C_out, (gdep+1)*C_in), bias (C_out,)
    weight = 0.1 * jax.random.normal(k3, (C_out, (gdep + 1) * C_in), dtype=jnp.float32)
    bias = 0.1 * jax.random.normal(k4, (C_out,), dtype=jnp.float32)

    fwd = jax.jit(lambda x, adj, w, b: mixprop_forward(x, adj, w, b, gdep=gdep, alpha=alpha))
    out = jax.block_until_ready(fwd(x, adj, weight, bias))

    ref = mixprop_reference(x, adj, weight, bias, gdep=gdep, alpha=alpha)
    assert out.shape == (B, C_out, N, L), out.shape
    assert jnp.allclose(out, ref, atol=1e-4, rtol=1e-4), float(jnp.max(jnp.abs(out - ref)))
    print("KERNEL_OK")
</pallas_src>

<mosaic_0001>
module attributes {stable_mosaic.version = 11 : i64} {
  func.func @_prop_kernel(%arg0: i32, %arg1: i32, %arg2: memref<1x4x16x8xf32, #tpu.memory_space<vmem>>, %arg3: memref<16x16xf32, #tpu.memory_space<vmem>>, %arg4: memref<1x2x4x16x8xf32, #tpu.memory_space<vmem>>) attributes {dimension_semantics = [#tpu.dimension_semantics<parallel>, #tpu.dimension_semantics<parallel>], iteration_bounds = array<i64: 2, 1>, scalar_prefetch = 0 : i64, scratch_operands = 0 : i64, tpu.core_type = #tpu.core_type<tc>, window_params = [{transform_indices = @transform_0, window_bounds = array<i64: 1, 4, 16, 8>}, {pipeline_mode = #tpu.pipeline_mode<synchronous>, transform_indices = @transform_1, window_bounds = array<i64: 16, 16>}, {transform_indices = @transform_2, window_bounds = array<i64: 1, 2, 4, 16, 8>}]} {
    %c0 = arith.constant 0 : index
    %c0_0 = arith.constant 0 : index
    %0 = vector.load %arg3[%c0, %c0_0] : memref<16x16xf32, #tpu.memory_space<vmem>>, vector<16x16xf32>
    %c0_1 = arith.constant 0 : index
    %c0_2 = arith.constant 0 : index
    %c0_3 = arith.constant 0 : index
    %c0_4 = arith.constant 0 : index
    %1 = vector.load %arg2[%c0_1, %c0_2, %c0_3, %c0_4] : memref<1x4x16x8xf32, #tpu.memory_space<vmem>>, vector<1x1x16x8xf32>
    %2 = vector.shape_cast %1 : vector<1x1x16x8xf32> to vector<16x8xf32>
    %cst = arith.constant 5.000000e-02 : f32
    %3 = vector.broadcast %cst : f32 to vector<16x8xf32>
    %4 = arith.mulf %3, %2 : vector<16x8xf32>
    %cst_5 = arith.constant dense<0.000000e+00> : vector<16x8xf32>
    %5 = tpu.matmul %0, %2, %cst_5 {dimension_numbers = #tpu.dot_dimension_numbers<[1], [0], [0], [1], [0, 0, 1, 1], [], []>} : vector<16x16xf32>, vector<16x8xf32>, vector<16x8xf32> -> vector<16x8xf32>
    %6 = arith.addf %4, %5 : vector<16x8xf32>
    %c0_6 = arith.constant 0 : index
    %c0_7 = arith.constant 0 : index
    %c0_8 = arith.constant 0 : index
    %c0_9 = arith.constant 0 : index
    %c0_10 = arith.constant 0 : index
    %7 = vector.load %arg4[%c0_6, %c0_7, %c0_8, %c0_9, %c0_10] : memref<1x2x4x16x8xf32, #tpu.memory_space<vmem>>, vector<1x1x1x16x8xf32>
    %8 = vector.shape_cast %7 : vector<1x1x1x16x8xf32> to vector<16x8xf32>
    %9 = vector.shape_cast %6 : vector<16x8xf32> to vector<1x1x1x16x8xf32>
    tpu.vector_store %arg4[%c0_6, %c0_7, %c0_8, %c0_9, %c0_10], %9 {strides = array<i32>} : memref<1x2x4x16x8xf32, #tpu.memory_space<vmem>>, vector<1x1x1x16x8xf32>,
    %cst_11 = arith.constant dense<0.000000e+00> : vector<16x8xf32>
    %10 = tpu.matmul %0, %6, %cst_11 {dimension_numbers = #tpu.dot_dimension_numbers<[1], [0], [0], [1], [0, 0, 1, 1], [], []>} : vector<16x16xf32>, vector<16x8xf32>, vector<16x8xf32> -> vector<16x8xf32>
    %11 = arith.addf %4, %10 : vector<16x8xf32>
    %c0_12 = arith.constant 0 : index
    %c1 = arith.constant 1 : index
    %c0_13 = arith.constant 0 : index
    %c0_14 = arith.constant 0 : index
    %c0_15 = arith.constant 0 : index
    %12 = vector.load %arg4[%c0_12, %c1, %c0_13, %c0_14, %c0_15] : memref<1x2x4x16x8xf32, #tpu.memory_space<vmem>>, vector<1x1x1x16x8xf32>
    %13 = vector.shape_cast %12 : vector<1x1x1x16x8xf32> to vector<16x8xf32>
    %14 = vector.shape_cast %11 : vector<16x8xf32> to vector<1x1x1x16x8xf32>
    tpu.vector_store %arg4[%c0_12, %c1, %c0_13, %c0_14, %c0_15], %14 {strides = array<i32>} : memref<1x2x4x16x8xf32, #tpu.memory_space<vmem>>, vector<1x1x1x16x8xf32>,
    %c0_16 = arith.constant 0 : index
    %c1_17 = arith.constant 1 : index
    %c0_18 = arith.constant 0 : index
    %c0_19 = arith.constant 0 : index
    %15 = vector.load %arg2[%c0_16, %c1_17, %c0_18, %c0_19] : memref<1x4x16x8xf32, #tpu.memory_space<vmem>>, vector<1x1x16x8xf32>
    %16 = vector.shape_cast %15 : vector<1x1x16x8xf32> to vector<16x8xf32>
    %cst_20 = arith.constant 5.000000e-02 : f32
    %17 = vector.broadcast %cst_20 : f32 to vector<16x8xf32>
    %18 = arith.mulf %17, %16 : vector<16x8xf32>
    %cst_21 = arith.constant dense<0.000000e+00> : vector<16x8xf32>
    %19 = tpu.matmul %0, %16, %cst_21 {dimension_numbers = #tpu.dot_dimension_numbers<[1], [0], [0], [1], [0, 0, 1, 1], [], []>} : vector<16x16xf32>, vector<16x8xf32>, vector<16x8xf32> -> vector<16x8xf32>
    %20 = arith.addf %18, %19 : vector<16x8xf32>
    %c0_22 = arith.constant 0 : index
    %c0_23 = arith.constant 0 : index
    %c1_24 = arith.constant 1 : index
    %c0_25 = arith.constant 0 : index
    %c0_26 = arith.constant 0 : index
    %21 = vector.load %arg4[%c0_22, %c0_23, %c1_24, %c0_25, %c0_26] : memref<1x2x4x16x8xf32, #tpu.memory_space<vmem>>, vector<1x1x1x16x8xf32>
    %22 = vector.shape_cast %21 : vector<1x1x1x16x8xf32> to vector<16x8xf32>
    %23 = vector.shape_cast %20 : vector<16x8xf32> to vector<1x1x1x16x8xf32>
    tpu.vector_store %arg4[%c0_22, %c0_23, %c1_24, %c0_25, %c0_26], %23 {strides = array<i32>} : memref<1x2x4x16x8xf32, #tpu.memory_space<vmem>>, vector<1x1x1x16x8xf32>,
    %cst_27 = arith.constant dense<0.000000e+00> : vector<16x8xf32>
    %24 = tpu.matmul %0, %20, %cst_27 {dimension_numbers = #tpu.dot_dimension_numbers<[1], [0], [0], [1], [0, 0, 1, 1], [], []>} : vector<16x16xf32>, vector<16x8xf32>, vector<16x8xf32> -> vector<16x8xf32>
    %25 = arith.addf %18, %24 : vector<16x8xf32>
    %c0_28 = arith.constant 0 : index
    %c1_29 = arith.constant 1 : index
    %c1_30 = arith.constant 1 : index
    %c0_31 = arith.constant 0 : index
    %c0_32 = arith.constant 0 : index
    %26 = vector.load %arg4[%c0_28, %c1_29, %c1_30, %c0_31, %c0_32] : memref<1x2x4x16x8xf32, #tpu.memory_space<vmem>>, vector<1x1x1x16x8xf32>
    %27 = vector.shape_cast %26 : vector<1x1x1x16x8xf32> to vector<16x8xf32>
    %28 = vector.shape_cast %25 : vector<16x8xf32> to vector<1x1x1x16x8xf32>
    tpu.vector_store %arg4[%c0_28, %c1_29, %c1_30, %c0_31, %c0_32], %28 {strides = array<i32>} : memref<1x2x4x16x8xf32, #tpu.memory_space<vmem>>, vector<1x1x1x16x8xf32>,
    %c0_33 = arith.constant 0 : index
    %c2 = arith.constant 2 : index
    %c0_34 = arith.constant 0 : index
    %c0_35 = arith.constant 0 : index
    %29 = vector.load %arg2[%c0_33, %c2, %c0_34, %c0_35] : memref<1x4x16x8xf32, #tpu.memory_space<vmem>>, vector<1x1x16x8xf32>
    %30 = vector.shape_cast %29 : vector<1x1x16x8xf32> to vector<16x8xf32>
    %cst_36 = arith.constant 5.000000e-02 : f32
    %31 = vector.broadcast %cst_36 : f32 to vector<16x8xf32>
    %32 = arith.mulf %31, %30 : vector<16x8xf32>
    %cst_37 = arith.constant dense<0.000000e+00> : vector<16x8xf32>
    %33 = tpu.matmul %0, %30, %cst_37 {dimension_numbers = #tpu.dot_dimension_numbers<[1], [0], [0], [1], [0, 0, 1, 1], [], []>} : vector<16x16xf32>, vector<16x8xf32>, vector<16x8xf32> -> vector<16x8xf32>
    %34 = arith.addf %32, %33 : vector<16x8xf32>
    %c0_38 = arith.constant 0 : index
    %c0_39 = arith.constant 0 : index
    %c2_40 = arith.constant 2 : index
    %c0_41 = arith.constant 0 : index
    %c0_42 = arith.constant 0 : index
    %35 = vector.load %arg4[%c0_38, %c0_39, %c2_40, %c0_41, %c0_42] : memref<1x2x4x16x8xf32, #tpu.memory_space<vmem>>, vector<1x1x1x16x8xf32>
    %36 = vector.shape_cast %35 : vector<1x1x1x16x8xf32> to vector<16x8xf32>
    %37 = vector.shape_cast %34 : vector<16x8xf32> to vector<1x1x1x16x8xf32>
    tpu.vector_store %arg4[%c0_38, %c0_39, %c2_40, %c0_41, %c0_42], %37 {strides = array<i32>} : memref<1x2x4x16x8xf32, #tpu.memory_space<vmem>>, vector<1x1x1x16x8xf32>,
    %cst_43 = arith.constant dense<0.000000e+00> : vector<16x8xf32>
    %38 = tpu.matmul %0, %34, %cst_43 {dimension_numbers = #tpu.dot_dimension_numbers<[1], [0], [0], [1], [0, 0, 1, 1], [], []>} : vector<16x16xf32>, vector<16x8xf32>, vector<16x8xf32> -> vector<16x8xf32>
    %39 = arith.addf %32, %38 : vector<16x8xf32>
    %c0_44 = arith.constant 0 : index
    %c1_45 = arith.constant 1 : index
    %c2_46 = arith.constant 2 : index
    %c0_47 = arith.constant 0 : index
    %c0_48 = arith.constant 0 : index
    %40 = vector.load %arg4[%c0_44, %c1_45, %c2_46, %c0_47, %c0_48] : memref<1x2x4x16x8xf32, #tpu.memory_space<vmem>>, vector<1x1x1x16x8xf32>
    %41 = vector.shape_cast %40 : vector<1x1x1x16x8xf32> to vector<16x8xf32>
    %42 = vector.shape_cast %39 : vector<16x8xf32> to vector<1x1x1x16x8xf32>
    tpu.vector_store %arg4[%c0_44, %c1_45, %c2_46, %c0_47, %c0_48], %42 {strides = array<i32>} : memref<1x2x4x16x8xf32, #tpu.memory_space<vmem>>, vector<1x1x1x16x8xf32>,
    %c0_49 = arith.constant 0 : index
    %c3 = arith.constant 3 : index
    %c0_50 = arith.constant 0 : index
    %c0_51 = arith.constant 0 : index
    %43 = vector.load %arg2[%c0_49, %c3, %c0_50, %c0_51] : memref<1x4x16x8xf32, #tpu.memory_space<vmem>>, vector<1x1x16x8xf32>
    %44 = vector.shape_cast %43 : vector<1x1x16x8xf32> to vector<16x8xf32>
    %cst_52 = arith.constant 5.000000e-02 : f32
    %45 = vector.broadcast %cst_52 : f32 to vector<16x8xf32>
    %46 = arith.mulf %45, %44 : vector<16x8xf32>
    %cst_53 = arith.constant dense<0.000000e+00> : vector<16x8xf32>
    %47 = tpu.matmul %0, %44, %cst_53 {dimension_numbers = #tpu.dot_dimension_numbers<[1], [0], [0], [1], [0, 0, 1, 1], [], []>} : vector<16x16xf32>, vector<16x8xf32>, vector<16x8xf32> -> vector<16x8xf32>
    %48 = arith.addf %46, %47 : vector<16x8xf32>
    %c0_54 = arith.constant 0 : index
    %c0_55 = arith.constant 0 : index
    %c3_56 = arith.constant 3 : index
    %c0_57 = arith.constant 0 : index
    %c0_58 = arith.constant 0 : index
    %49 = vector.load %arg4[%c0_54, %c0_55, %c3_56, %c0_57, %c0_58] : memref<1x2x4x16x8xf32, #tpu.memory_space<vmem>>, vector<1x1x1x16x8xf32>
    %50 = vector.shape_cast %49 : vector<1x1x1x16x8xf32> to vector<16x8xf32>
    %51 = vector.shape_cast %48 : vector<16x8xf32> to vector<1x1x1x16x8xf32>
    tpu.vector_store %arg4[%c0_54, %c0_55, %c3_56, %c0_57, %c0_58], %51 {strides = array<i32>} : memref<1x2x4x16x8xf32, #tpu.memory_space<vmem>>, vector<1x1x1x16x8xf32>,
    %cst_59 = arith.constant dense<0.000000e+00> : vector<16x8xf32>
    %52 = tpu.matmul %0, %48, %cst_59 {dimension_numbers = #tpu.dot_dimension_numbers<[1], [0], [0], [1], [0, 0, 1, 1], [], []>} : vector<16x16xf32>, vector<16x8xf32>, vector<16x8xf32> -> vector<16x8xf32>
    %53 = arith.addf %46, %52 : vector<16x8xf32>
    %c0_60 = arith.constant 0 : index
    %c1_61 = arith.constant 1 : index
    %c3_62 = arith.constant 3 : index
    %c0_63 = arith.constant 0 : index
    %c0_64 = arith.constant 0 : index
    %54 = vector.load %arg4[%c0_60, %c1_61, %c3_62, %c0_63, %c0_64] : memref<1x2x4x16x8xf32, #tpu.memory_space<vmem>>, vector<1x1x1x16x8xf32>
    %55 = vector.shape_cast %54 : vector<1x1x1x16x8xf32> to vector<16x8xf32>
    %56 = vector.shape_cast %53 : vector<16x8xf32> to vector<1x1x1x16x8xf32>
    tpu.vector_store %arg4[%c0_60, %c1_61, %c3_62, %c0_63, %c0_64], %56 {strides = array<i32>} : memref<1x2x4x16x8xf32, #tpu.memory_space<vmem>>, vector<1x1x1x16x8xf32>,
    return
  }
  func.func @transform_0(%arg0: i32, %arg1: i32) -> (i32, i32, i32, i32) {
    %c0_i32 = arith.constant 0 : i32
    %c0_i32_0 = arith.constant 0 : i32
    %c0_i32_1 = arith.constant 0 : i32
    return %arg0, %arg1, %c0_i32, %c0_i32_0 : i32, i32, i32, i32
  }
  func.func @transform_1(%arg0: i32, %arg1: i32) -> (i32, i32) {
    %c0_i32 = arith.constant 0 : i32
    %c0_i32_0 = arith.constant 0 : i32
    %c0_i32_1 = arith.constant 0 : i32
    return %c0_i32, %c0_i32_0 : i32, i32
  }
  func.func @transform_2(%arg0: i32, %arg1: i32) -> (i32, i32, i32, i32, i32) {
    %c0_i32 = arith.constant 0 : i32
    %c0_i32_0 = arith.constant 0 : i32
    %c0_i32_1 = arith.constant 0 : i32
    %c0_i32_2 = arith.constant 0 : i32
    return %arg0, %c0_i32, %arg1, %c0_i32_0, %c0_i32_1 : i32, i32, i32, i32, i32
  }
}

module attributes {stable_mosaic.version = 11 : i64} {
  func.func @_mlp_kernel(%arg0: i32, %arg1: memref<1x4x128xf32, #tpu.memory_space<vmem>>, %arg2: memref<1x8x128xf32, #tpu.memory_space<vmem>>, %arg3: memref<8x4xf32, #tpu.memory_space<vmem>>, %arg4: memref<8x8xf32, #tpu.memory_space<vmem>>, %arg5: memref<8x1xf32, #tpu.memory_space<vmem>>, %arg6: memref<1x8x128xf32, #tpu.memory_space<vmem>>) attributes {dimension_semantics = [#tpu.dimension_semantics<parallel>], iteration_bounds = array<i64: 2>, scalar_prefetch = 0 : i64, scratch_operands = 0 : i64, tpu.core_type = #tpu.core_type<tc>, window_params = [{transform_indices = @transform_0, window_bounds = array<i64: 1, 4, 128>}, {transform_indices = @transform_1, window_bounds = array<i64: 1, 8, 128>}, {pipeline_mode = #tpu.pipeline_mode<synchronous>, transform_indices = @transform_2, window_bounds = array<i64: 8, 4>}, {pipeline_mode = #tpu.pipeline_mode<synchronous>, transform_indices = @transform_3, window_bounds = array<i64: 8, 8>}, {pipeline_mode = #tpu.pipeline_mode<synchronous>, transform_indices = @transform_4, window_bounds = array<i64: 8, 1>}, {transform_indices = @transform_5, window_bounds = array<i64: 1, 8, 128>}]} {
    %c0 = arith.constant 0 : index
    %c0_0 = arith.constant 0 : index
    %0 = vector.load %arg3[%c0, %c0_0] : memref<8x4xf32, #tpu.memory_space<vmem>>, vector<8x4xf32>
    %c0_1 = arith.constant 0 : index
    %c0_2 = arith.constant 0 : index
    %c0_3 = arith.constant 0 : index
    %1 = vector.load %arg1[%c0_1, %c0_2, %c0_3] : memref<1x4x128xf32, #tpu.memory_space<vmem>>, vector<1x4x128xf32>
    %2 = vector.shape_cast %1 : vector<1x4x128xf32> to vector<4x128xf32>
    %cst = arith.constant dense<0.000000e+00> : vector<8x128xf32>
    %3 = tpu.matmul %0, %2, %cst {dimension_numbers = #tpu.dot_dimension_numbers<[1], [0], [0], [1], [0, 0, 1, 1], [], []>} : vector<8x4xf32>, vector<4x128xf32>, vector<8x128xf32> -> vector<8x128xf32>
    %c0_4 = arith.constant 0 : index
    %c0_5 = arith.constant 0 : index
    %4 = vector.load %arg4[%c0_4, %c0_5] : memref<8x8xf32, #tpu.memory_space<vmem>>, vector<8x8xf32>
    %c0_6 = arith.constant 0 : index
    %c0_7 = arith.constant 0 : index
    %c0_8 = arith.constant 0 : index
    %5 = vector.load %arg2[%c0_6, %c0_7, %c0_8] : memref<1x8x128xf32, #tpu.memory_space<vmem>>, vector<1x8x128xf32>
    %6 = vector.shape_cast %5 : vector<1x8x128xf32> to vector<8x128xf32>
    %cst_9 = arith.constant dense<0.000000e+00> : vector<8x128xf32>
    %7 = tpu.matmul %4, %6, %cst_9 {dimension_numbers = #tpu.dot_dimension_numbers<[1], [0], [0], [1], [0, 0, 1, 1], [], []>} : vector<8x8xf32>, vector<8x128xf32>, vector<8x128xf32> -> vector<8x128xf32>
    %8 = arith.addf %3, %7 : vector<8x128xf32>
    %c0_10 = arith.constant 0 : index
    %c0_11 = arith.constant 0 : index
    %9 = vector.load %arg5[%c0_10, %c0_11] : memref<8x1xf32, #tpu.memory_space<vmem>>, vector<8x1xf32>
    %10 = vector.broadcast %9 : vector<8x1xf32> to vector<8x128xf32>
    %11 = arith.addf %8, %10 : vector<8x128xf32>
    %c0_12 = arith.constant 0 : index
    %c0_13 = arith.constant 0 : index
    %c0_14 = arith.constant 0 : index
    %12 = vector.load %arg6[%c0_12, %c0_13, %c0_14] : memref<1x8x128xf32, #tpu.memory_space<vmem>>, vector<1x8x128xf32>
    %13 = vector.shape_cast %12 : vector<1x8x128xf32> to vector<8x128xf32>
    %14 = vector.shape_cast %11 : vector<8x128xf32> to vector<1x8x128xf32>
    tpu.vector_store %arg6[%c0_12, %c0_13, %c0_14], %14 {strides = array<i32>} : memref<1x8x128xf32, #tpu.memory_space<vmem>>, vector<1x8x128xf32>,
    return
  }
  func.func @transform_0(%arg0: i32) -> (i32, i32, i32) {
    %c0_i32 = arith.constant 0 : i32
    %c0_i32_0 = arith.constant 0 : i32
    %c0_i32_1 = arith.constant 0 : i32
    return %arg0, %c0_i32, %c0_i32_0 : i32, i32, i32
  }
  func.func @transform_1(%arg0: i32) -> (i32, i32, i32) {
    %c0_i32 = arith.constant 0 : i32
    %c0_i32_0 = arith.constant 0 : i32
    %c0_i32_1 = arith.constant 0 : i32
    return %arg0, %c0_i32, %c0_i32_0 : i32, i32, i32
  }
  func.func @transform_2(%arg0: i32) -> (i32, i32) {
    %c0_i32 = arith.constant 0 : i32
    %c0_i32_0 = arith.constant 0 : i32
    %c0_i32_1 = arith.constant 0 : i32
    return %c0_i32, %c0_i32_0 : i32, i32
  }
  func.func @transform_3(%arg0: i32) -> (i32, i32) {
    %c0_i32 = arith.constant 0 : i32
    %c0_i32_0 = arith.constant 0 : i32
    %c0_i32_1 = arith.constant 0 : i32
    return %c0_i32, %c0_i32_0 : i32, i32
  }
  func.func @transform_4(%arg0: i32) -> (i32, i32) {
    %c0_i32 = arith.constant 0 : i32
    %c0_i32_0 = arith.constant 0 : i32
    %c0_i32_1 = arith.constant 0 : i32
    return %c0_i32, %c0_i32_0 : i32, i32
  }
  func.func @transform_5(%arg0: i32) -> (i32, i32, i32) {
    %c0_i32 = arith.constant 0 : i32
    %c0_i32_0 = arith.constant 0 : i32
    %c0_i32_1 = arith.constant 0 : i32
    return %arg0, %c0_i32, %c0_i32_0 : i32, i32, i32
  }
}

</mosaic_0001>

<bundles_post_ra>
// kernel: _lambda_.2
= control target key start
LH: loop header
LB: loop body
LE: loop exit
PB: predicated region body
PF: predicated region fallthrough
CT: control target
= control target key end

     0   :  { %7 = vsyncpa [#allocation3], 0  ;;  %s1697_s0 = inlined_call_operand.hbm [shape: f32[2,4,16,8], index: 0, kind: input, shape index: {}]   ;;  %s1698_s1 = inlined_call_operand.hbm [shape: f32[16,16], index: 1, kind: input, shape index: {}]   ;;  %s1699_s2 = inlined_call_operand.hbm [shape: f32[2,2,4,16,8], index: 2, kind: output, shape index: {}]  }
   0x1   :  { %9 = vsyncpa [#allocation3 + $0x1], 0 }
   0x2   :  { %10 = vsyncpa [#allocation6], 0 }
   0x3   :  { %11 = vsyncpa [#allocation4], 0 }
   0x4   :  { %13 = vsyncpa [#allocation4 + $0x1], 0  ;;  %s1400_s9 = smov 0   ;;  %s1402_s10 = smov 0  }
   0x5   :  { %s1404_s11 = smov 0   ;;  %s1406_s12 = smov 0  }
   0x6   :  { %s1408_s13 = smov 0   ;;  %s1410_s14 = smov 0  }
   0x7 LB: > { %s980_s15 = sadd.s32 4294967295, %s1376_s14   ;;  %s981_s16 = sadd.s32 4294967294, %s1376_s14   ;;  %s1376_s14 = sphi %s1410_s14, %s19_s14   ;;  %s1372_s13 = sphi %s1408_s13, %s1723_s13   ;;  %s1368_s12 = sphi %s1406_s12, %s1722_s12   ;;  %s1364_s11 = sphi %s1404_s11, %s1721_s11   ;;  %s1360_s10 = sphi %s1402_s10, %s1720_s10   ;;  %s1356_s9 = sphi %s1400_s9, %s1719_s9  }
   0x8   : > { %p53_p0 = scmp.ne.s32.totalorder %s1360_s10, %s1356_s9  ;;  %p1434_p1 = scmp.eq.s32.totalorder %s980_s15, 0 }
   0x9   : > { %p1438_p2 = scmp.eq.s32.totalorder %s980_s15, 1  ;;  %p106_p3 = scmp.eq.s32.totalorder %s981_s16, 1 }
   0xa   : > { %s1704_s17 = scalar_select %p1434_p1, 1, 0 }
   0xb   : > { %s1705_s18 = scalar_select %p1438_p2, 1, 0 }
   0xc   : > { %p1444_p4 = por %p1434_p1, %p53_p0  ;;  %p982_p5 = scmp.ge.s32.totalorder %s1376_s14, 1 }
   0xd   : > { %p1449_p6 = por %p106_p3, %p53_p0  ;;  %p113_p7 = scmp.lt.s32.totalorder %s1376_s14, 3 }
   0xe   : > { %s1706_s19 = scalar_select %p1444_p4, 1, 0 }
   0xf   : > { %s1707_s20 = scalar_select %p1449_p6, 1, 0 }
  0x10   : > { %p1454_p8 = pnand %p982_p5, %p113_p7  ;;  %s1378_s22 = smov [#allocation5]  }
  0x11   : > { %s125_s23 = sshll.u32 %s1378_s22, 4  ;;  %s31_s25 = sadd.s32 1, %s1372_s13  ;;  %s126_s23 = int_to_ptr.vmem [resolvable:$true] %s125_s23 }
  0x12   : > { %s1708_s21 = scalar_select %p1454_p8, 1, 0 }
  0x13   : > { %p1163_p9 = pneg %p1454_p8  ;;  %s1232_s28 = scalar_lea.hbm %s1698_s1, 256 }
  0x14   : > { %p1233_p12 = scmp.ne.s32.totalorder %s1698_s1, %s1232_s28  ;;  %p1239_p5 = scmp.lt.u32.totalorder %s1232_s28, %s1698_s1 }
  0x15   : > { %p1463_p11 = pnand %p1163_p9, %p1434_p1 }
  0x17   : > { %p1234_p13 = pneg %p1463_p11 }
  0x19   : > { %p1235_p0 = pnand %p1234_p13, %p1233_p12 }
  0x1b   : > { %p1236_p3 = pneg %p1235_p0 }
  0x1d   : > { %p1241_p7 = pnand %p1239_p5, %p1236_p3 }
  0x1f   : > { %1244 = shalt.err (!%p1241_p7)
}
  0x20   : > { %s1245_s5 = scalar_lea.vmem %s126_s23, 256  ;;  %p1253_p1 = scmp.lt.s32.totalorder %s126_s23, %s126_s23 }
  0x21   : > { %p1246_p9 = scmp.ne.s32.totalorder %s126_s23, %s1245_s5  ;;  %p1254_p4 = scmp.lt.s32.totalorder %s1245_s5, %s1245_s5 }
  0x23   : > { %p1248_p10 = pnand %p1246_p9, %p1234_p13  ;;  %p1255_p8 = por %p1254_p4, %p1253_p1 }
  0x25   : > { %p1249_p6 = pneg %p1248_p10 }
  0x27   : > { %p1256_p2 = pnand %p1255_p8, %p1249_p6 }
  0x29   : > { %1259 = shalt.err (!%p1256_p2)
}
  0x2a   : > { %s1379_s6 = smov 128   ;;  %s1380_s7 = smov 8  }
  0x2b   : > { %1166 = dma.hbm_to_vmem [thread:$0]  (!%p1463_p11), %s1698_s1, 256, %s126_s23, [#allocation6], %s1379_s6, %s1379_s6, %s1380_s7  }
  0x2c   : > { %p33_p1 = scmp.ge.s32.totalorder %s31_s25, 2  ;;  %s40_s16 = sadd.s32 1, %s1364_s11 }
  0x2d   : > { %p47_p2 = scmp.ne.s32.totalorder %s1364_s11, %s1360_s10  ;;  %p48_p4 = scmp.eq.s32.totalorder %s1376_s14, 0 }
  0x2e   : > { %s1725_s25 = smov (%p33_p1, %s31_s25), 0  ;;  %p1711_p8 = scmp.ne.s32.totalorder %s1705_s18, 0 }
  0x2f   : > { %p1493_p6 = por %p48_p4, %p47_p2  ;;  %s35_s26 = ssub.s32 %s1372_s13, %s1725_s25 }
  0x30   : > { %p1499_p10 = por %p1711_p8, %p47_p2  ;;  %p1176_p12 = scmp.lt.s32.totalorder %s1376_s14, 2 }
  0x31   : > { %p38_p11 = scmp.eq.s32.totalorder %s35_s26, 0  ;;  %s139_s23 = sand.u32 1, %s1364_s11  }
  0x32   : > { %s985_s27 = sshll.u32 %s139_s23, 6  ;;  %s1033_s29 = sshll.u32 %s1372_s13, 10 }
  0x33   : > { %s1508_s28 = scalar_select %p38_p11, %s1364_s11, %s40_s16  }
  0x34   : > { %s1514_s4 = scalar_lea.hbm %s1697_s0, %s1033_s29  ;;  %s143_s18 = scalar_lea.vmem [#allocation2], %s985_s27 }
  0x35   : > { %s153_s5 = sshll.u32 %s143_s18, 4  ;;  %p1520_p13 = pnand %p1176_p12, %p1493_p6  ;;  %s1516_s5 = int_to_ptr.vmem [resolvable:$true] %s153_s5 }
  0x36   : > { %s1524_s15 = scalar_lea.sflag [#allocation3], %s139_s23  ;;  %s1260_s16 = scalar_lea.hbm %s1514_s4, 1024 }
  0x37   : > { %p1261_p0 = scmp.ne.s32.totalorder %s1514_s4, %s1260_s16  ;;  %p1262_p3 = pneg %p1520_p13 }
  0x38   : > { %s1265_s22 = scalar_lea.hbm %s1697_s0, 2048  ;;  %p1266_p9 = scmp.lt.u32.totalorder %s1514_s4, %s1697_s0 }
  0x39   : > { %p1263_p5 = pnand %p1262_p3, %p1261_p0  ;;  %p1267_p1 = scmp.lt.u32.totalorder %s1265_s22, %s1260_s16 }
  0x3a   : > { %p1269_p4 = scmp.lt.u32.totalorder %s1260_s16, %s1514_s4 }
  0x3b   : > { %p1264_p7 = pneg %p1263_p5  ;;  %p1268_p2 = por %p1267_p1, %p1266_p9 }
  0x3d   : > { %p1270_p6 = por %p1269_p4, %p1268_p2 }
  0x3f   : > { %p1271_p8 = pnand %p1270_p6, %p1264_p7 }
  0x41   : > { %1274 = shalt.err (!%p1271_p8)
}
  0x42   : > { %s1275_s23 = scalar_lea.vmem %s1516_s5, 1024  ;;  %s1381_s3 = smov [#allocation2]  }
  0x43   : > { %p1276_p12 = scmp.ne.s32.totalorder %s1516_s5, %s1275_s23  ;;  %s1280_s18 = sshll.u32 %s1381_s3, 4  ;;  %s1281_s18 = int_to_ptr.vmem [resolvable:$false] %s1280_s18 }
  0x44   : > { %s1282_s26 = scalar_lea.vmem %s1281_s18, 2048  ;;  %p1283_p5 = scmp.lt.s32.totalorder %s1516_s5, %s1281_s18 }
  0x45   : > { %p1278_p11 = pnand %p1276_p12, %p1262_p3  ;;  %p1284_p9 = scmp.lt.s32.totalorder %s1282_s26, %s1275_s23 }
  0x47   : > { %p1279_p0 = pneg %p1278_p11  ;;  %p1285_p1 = por %p1284_p9, %p1283_p5 }
  0x49   : > { %p1286_p2 = pnand %p1285_p1, %p1279_p0 }
  0x4b   : > { %1289 = shalt.err (!%p1286_p2)
}
  0x4c   : > { %1170 = dma.hbm_to_vmem [thread:$0]  (!%p1520_p13), %s1514_s4, 1024, %s1516_s5, %s1524_s15, %s1379_s6, %s1379_s6, %s1380_s7  }
  0x4d   : > { %p1714_p3 = scmp.ne.s32.totalorder %s1708_s21, 0 }
  0x4e   : > { %s1558_s16 = sand.u32 (!%p1714_p3), 1, %s1360_s10   ;;  %p1715_p7 = scmp.ne.s32.totalorder (!%p1714_p3), %s1706_s19, 0 }
  0x4f   : > { %165 = sbr.rel (%p1714_p3) target bundleno = 560 (0x230), region = 28  ;;  %s989_s27 = sshll.u32 (!%p1714_p3), %s1558_s16, 6 }
  0x50   : > { %s168_s22 = scalar_lea.sflag (!%p1714_p3), [#allocation3], %s1558_s16  ;;  %s171_s29 = scalar_lea.vmem (!%p1714_p3), [#allocation2], %s989_s27 }
  0x56   : > { %1343 = dma.done.wait (%p1715_p7), %s168_s22, 1024  }
  0x57   : > { %1345 = vsyncadd (%p1715_p7), %s168_s22, 4294966272  ;;  %p1716_p4 = scmp.ne.s32.totalorder %s1704_s17, 0 }
  0x59   : > { %1347 = dma.done.wait (%p1716_p4), [#allocation6], 256  }
  0x5a   : > { %1349 = vsyncadd (%p1716_p4), [#allocation6], 4294967040  ;;  %vm204_vm0 = vcmask 130048   ;;  %v200_v0 = vld [vmem:[%s171_s29] sm:$0xff]  ;;  %v201_v1 = vld [vmem:[%s171_s29 + $0x8] sm:$0xff]  ;;  %s991_s17 = sshll.u32 %s1558_s16, 7 }
  0x5b   : > { %v1570_v2 = vld [vmem:[#allocation5] sm:$0xff]  ;;  %v1123_v3 = vpack.c.bf16 %v201_v1, %v200_v0  ;;  %v998_v4 = vld [vmem:[%s171_s29 + $0x10] sm:$0xff]  ;;  %v999_v5 = vld [vmem:[%s171_s29 + $0x18] sm:$0xff]  ;;  %v203_v14 = vmul.f32 0.05, %v201_v1  ;;  %vm288_vm1 = vcmask 64512  }
  0x5c   : > { %1071 = vmatprep.mubr.msk.f32.mxu0 %vm204_vm0, %v1570_v2  ;;  %1078 = vmatprep.mubr.msk.f32.mxu1 %vm204_vm0, %v1570_v2  ;;  %v1131_v6 = vpack.c.bf16 %v999_v5, %v998_v4  ;;  %v1008_v7 = vld [vmem:[%s171_s29 + $0x20] sm:$0xff]  ;;  %v1009_v8 = vld [vmem:[%s171_s29 + $0x28] sm:$0xff]  ;;  %v1018_v11 = vld [vmem:[%s171_s29 + $0x30] sm:$0xff]  ;;  %v202_v15 = vmul.f32 0.05, %v200_v0  ;;  %s1593_s19 = scalar_lea.vmem [#allocation7], %s991_s17 }
  0x5d   : > { %1124 = vmatprep.subr.bf16.mxu0 %v1123_v3  ;;  %v1576_v9 = vld [vmem:[#allocation5 + $0x8] sm:$0xff]  ;;  %v1139_v10 = vpack.c.bf16 %v1009_v8, %v1008_v7  ;;  %v1019_v12 = vld [vmem:[%s171_s29 + $0x38] sm:$0xff]  ;;  %v375_v19 = vmul.f32 0.05, %v999_v5  ;;  %v374_v21 = vmul.f32 0.05, %v998_v4 }
  0x5e   : > { %1126 = vmatpush3.bf16.msra.mxu0 %v1123_v3  ;;  %v1147_v13 = vpack.c.bf16 %v1019_v12, %v1018_v11  ;;  %v540_v26 = vmul.f32 0.05, %v1009_v8  ;;  %v539_v28 = vmul.f32 0.05, %v1008_v7  ;;  %v705_v33 = vmul.f32 0.05, %v1019_v12 }
  0x5f   : > { %1132 = vmatprep.subr.bf16.mxu0 %v1131_v6  ;;  %v704_v35 = vmul.f32 0.05, %v1018_v11  ;;  %s1034_s21 = sshll.u32 %s1368_s12, 11  ;;  %s883_s6 = sshll.u32 %s1593_s19, 4  ;;  %s1644_s6 = int_to_ptr.vmem [resolvable:$true] %s883_s6 }
  0x60   : > { %s1642_s5 = scalar_lea.hbm %s1699_s2, %s1034_s21  ;;  %s867_s12 = scalar_lea.sflag [#allocation4], %s1558_s16 }
  0x61   : > { %1072 = vmatmul.mubr.msk.f32.vlgmr.msra.gmra.mrb[0].mxu0 %vm204_vm0, %v1576_v9  ;;  %s1290_s8 = scalar_lea.vmem %s1644_s6, 2048  ;;  %s1382_s15 = smov [#allocation7]  }
  0x62   : > { %1134 = vmatpush3.bf16.msra.mxu0 %v1131_v6  ;;  %1085 = vmatprep.mubr.msk.f32.mxu0 %vm204_vm0, %v1570_v2  ;;  %p1291_p13 = scmp.ne.s32.totalorder %s1644_s6, %s1290_s8  ;;  %s1294_s30 = sshll.u32 %s1382_s15, 4  ;;  %s1295_s30 = int_to_ptr.vmem [resolvable:$false] %s1294_s30 }
  0x63   : > { %1140 = vmatprep.subr.bf16.mxu0 %v1139_v10  ;;  %s1296_s23 = scalar_lea.vmem %s1295_s30, 4096  ;;  %p1297_p12 = scmp.lt.s32.totalorder %s1644_s6, %s1295_s30 }
  0x64   : > { %p1292_p6 = pnand %p1291_p13, %p1499_p10  ;;  %p1298_p11 = scmp.lt.s32.totalorder %s1296_s23, %s1290_s8 }
  0x65   : > { %1086 = vmatmul.mubr.msk.f32.vlgmr.msra.gmra.mrb[2].mxu0 %vm204_vm0, %v1576_v9 }
  0x66   : > { %1142 = vmatpush3.bf16.msra.mxu0 %v1139_v10  ;;  %1099 = vmatprep.mubr.msk.f32.mxu0 %vm204_vm0, %v1570_v2  ;;  %p1293_p8 = pneg %p1292_p6  ;;  %p1299_p0 = por %p1298_p11, %p1297_p12 }
  0x67   : > { %1148 = vmatprep.subr.bf16.mxu0 %v1147_v13 }
  0x68   : > { %p1300_p5 = pnand %p1299_p0, %p1293_p8 }
  0x69   : > { %1100 = vmatmul.mubr.msk.f32.vlgmr.msra.gmra.mrb[4].mxu0 %vm204_vm0, %v1576_v9 }
  0x6a   : > { %1150 = vmatpush3.bf16.msra.mxu0 %v1147_v13  ;;  %1113 = vmatprep.mubr.msk.f32.mxu0 %vm204_vm0, %v1570_v2 }
  0x6d   : > { %1114 = vmatmul.mubr.msk.f32.vlgmr.msra.gmra.mrb[6].mxu0 %vm204_vm0, %v1576_v9 }
 0x134   : > { %v1073_v16 = vpop.f32.mrb[0].mxu0 }
 0x135   : > { %v287_v17 = vadd.f32 %v1073_v16, %v203_v14  ;;  %v277_v18 = vpop.f32.mrb[1].mxu0 }
 0x136   : > { %v286_v20 = vadd.f32 %v277_v18, %v202_v15 }
 0x137   : > { %290 = vst.msk [vmem:[%s1593_s19 + $0x8] sm:$0xff] %vm288_vm1, %v287_v17 }
 0x138   : > { %289 = vst.msk [vmem:[%s1593_s19] sm:$0xff] %vm288_vm1, %v286_v20  ;;  %v1087_v22 = vpop.f32.mrb[2].mxu0  ;;  %v1127_v23 = vpack.c.bf16 %v287_v17, %v286_v20 }
 0x139   : > { %v452_v24 = vadd.f32 %v1087_v22, %v375_v19  ;;  %v442_v25 = vpop.f32.mrb[3].mxu0 }
 0x13a   : > { %v451_v27 = vadd.f32 %v442_v25, %v374_v21  ;;  %1128 = vmatprep.subr.bf16.mxu1 %v1127_v23 }
 0x13b   : > { %1003 = vst.msk [vmem:[%s1593_s19 + $0x18] sm:$0xff] %vm288_vm1, %v452_v24  ;;  %1130 = vmatpush3.bf16.msra.mxu1 %v1127_v23 }
 0x13c   : > { %1002 = vst.msk [vmem:[%s1593_s19 + $0x10] sm:$0xff] %vm288_vm1, %v451_v27  ;;  %v1135_v29 = vpack.c.bf16 %v452_v24, %v451_v27  ;;  %v1101_v30 = vpop.f32.mrb[4].mxu0 }
 0x13d   : > { %v617_v31 = vadd.f32 %v1101_v30, %v540_v26  ;;  %v607_v32 = vpop.f32.mrb[5].mxu0 }
 0x13e   : > { %v616_v34 = vadd.f32 %v607_v32, %v539_v28  ;;  %1079 = vmatmul.mubr.msk.f32.vlgmr.msra.gmra.mrb[0].mxu1 %vm204_vm0, %v1576_v9  ;;  %1136 = vmatprep.subr.bf16.mxu1 %v1135_v29 }
 0x13f   : > { %1013 = vst.msk [vmem:[%s1593_s19 + $0x28] sm:$0xff] %vm288_vm1, %v617_v31  ;;  %1138 = vmatpush3.bf16.msra.mxu1 %v1135_v29  ;;  %1092 = vmatprep.mubr.msk.f32.mxu1 %vm204_vm0, %v1570_v2 }
 0x140   : > { %1012 = vst.msk [vmem:[%s1593_s19 + $0x20] sm:$0xff] %vm288_vm1, %v616_v34  ;;  %v1143_v36 = vpack.c.bf16 %v617_v31, %v616_v34  ;;  %v1115_v37 = vpop.f32.mrb[6].mxu0 }
 0x141   : > { %v782_v38 = vadd.f32 %v1115_v37, %v705_v33  ;;  %v772_v39 = vpop.f32.mrb[7].mxu0 }
 0x142   : > { %v781_v40 = vadd.f32 %v772_v39, %v704_v35  ;;  %1093 = vmatmul.mubr.msk.f32.vlgmr.msra.gmra.mrb[2].mxu1 %vm204_vm0, %v1576_v9  ;;  %1144 = vmatprep.subr.bf16.mxu1 %v1143_v36 }
 0x143   : > { %1023 = vst.msk [vmem:[%s1593_s19 + $0x38] sm:$0xff] %vm288_vm1, %v782_v38  ;;  %1146 = vmatpush3.bf16.msra.mxu1 %v1143_v36  ;;  %1106 = vmatprep.mubr.msk.f32.mxu1 %vm204_vm0, %v1570_v2 }
 0x144   : > { %1022 = vst.msk [vmem:[%s1593_s19 + $0x30] sm:$0xff] %vm288_vm1, %v781_v40  ;;  %v1151_v41 = vpack.c.bf16 %v782_v38, %v781_v40 }
 0x146   : > { %1107 = vmatmul.mubr.msk.f32.vlgmr.msra.gmra.mrb[4].mxu1 %vm204_vm0, %v1576_v9  ;;  %1152 = vmatprep.subr.bf16.mxu1 %v1151_v41 }
 0x147   : > { %1154 = vmatpush3.bf16.msra.mxu1 %v1151_v41  ;;  %1120 = vmatprep.mubr.msk.f32.mxu1 %vm204_vm0, %v1570_v2 }
 0x14a   : > { %1121 = vmatmul.mubr.msk.f32.vlgmr.msra.gmra.mrb[6].mxu1 %vm204_vm0, %v1576_v9 }
 0x211   : > { %v1080_v42 = vpop.f32.mrb[0].mxu1 }
 0x212   : > { %v367_v43 = vadd.f32 %v1080_v42, %v203_v14  ;;  %v357_v44 = vpop.f32.mrb[1].mxu1 }
 0x213   : > { %v366_v45 = vadd.f32 %v357_v44, %v202_v15 }
 0x214   : > { %997 = vst.msk [vmem:[%s1593_s19 + $0x48] sm:$0xff] %vm288_vm1, %v367_v43 }
 0x215   : > { %996 = vst.msk [vmem:[%s1593_s19 + $0x40] sm:$0xff] %vm288_vm1, %v366_v45  ;;  %v1094_v46 = vpop.f32.mrb[2].mxu1 }
 0x216   : > { %v532_v47 = vadd.f32 %v1094_v46, %v375_v19  ;;  %v522_v48 = vpop.f32.mrb[3].mxu1 }
 0x217   : > { %v531_v49 = vadd.f32 %v522_v48, %v374_v21 }
 0x218   : > { %1007 = vst.msk [vmem:[%s1593_s19 + $0x58] sm:$0xff] %vm288_vm1, %v532_v47 }
 0x219   : > { %1006 = vst.msk [vmem:[%s1593_s19 + $0x50] sm:$0xff] %vm288_vm1, %v531_v49  ;;  %v1108_v50 = vpop.f32.mrb[4].mxu1 }
 0x21a   : > { %v697_v51 = vadd.f32 %v1108_v50, %v540_v26  ;;  %v687_v52 = vpop.f32.mrb[5].mxu1 }
 0x21b   : > { %v696_v53 = vadd.f32 %v687_v52, %v539_v28 }
 0x21c   : > { %1017 = vst.msk [vmem:[%s1593_s19 + $0x68] sm:$0xff] %vm288_vm1, %v697_v51 }
 0x21d   : > { %1016 = vst.msk [vmem:[%s1593_s19 + $0x60] sm:$0xff] %vm288_vm1, %v696_v53  ;;  %v1122_v54 = vpop.f32.mrb[6].mxu1 }
 0x21e   : > { %v862_v55 = vadd.f32 %v1122_v54, %v705_v33  ;;  %v852_v56 = vpop.f32.mrb[7].mxu1 }
 0x21f   : > { %v861_v57 = vadd.f32 %v852_v56, %v704_v35 }
 0x220   : > { %1027 = vst.msk [vmem:[%s1593_s19 + $0x78] sm:$0xff] %vm288_vm1, %v862_v55 }
 0x221   : > { %1026 = vst.msk [vmem:[%s1593_s19 + $0x70] sm:$0xff] %vm288_vm1, %v861_v57 }
 0x222   : > { %1303 = shalt.err (!%p1300_p5)
}
 0x223   : > { %s1304_s3 = scalar_lea.hbm %s1642_s5, 2048  ;;  %s1308_s27 = scalar_lea.hbm %s1699_s2, 4096 }
 0x224   : > { %p1305_p9 = scmp.ne.s32.totalorder %s1642_s5, %s1304_s3  ;;  %p1309_p3 = scmp.lt.u32.totalorder %s1642_s5, %s1699_s2 }
 0x225   : > { %p1310_p7 = scmp.lt.u32.totalorder %s1308_s27, %s1304_s3  ;;  %p1312_p13 = scmp.lt.u32.totalorder %s1304_s3, %s1642_s5 }
 0x226   : > { %p1306_p1 = pnand %p1305_p9, %p1499_p10 }
 0x227   : > { %p1311_p4 = por %p1310_p7, %p1309_p3 }
 0x228   : > { %p1307_p2 = pneg %p1306_p1 }
 0x229   : > { %p1313_p6 = por %p1312_p13, %p1311_p4 }
 0x22b   : > { %p1314_p8 = pnand %p1313_p6, %p1307_p2 }
 0x22d   : > { %1317 = shalt.err (!%p1314_p8)
}
 0x22e   : > { %s1383_s17 = smov 128   ;;  %s1384_s19 = smov 8  }
 0x22f   : > { %1161 = dma.vmem_to_hbm [thread:$0]  (%p1499_p10), %s1644_s6, 2048, %s1642_s5, %s867_s12, %s1383_s17, %s1383_s17, %s1384_s19  }
 0x230 PF: > { %s898_s21 = sand.u32 1, %s1356_s9   ;;  %p1717_p12 = scmp.ne.s32.totalorder %s1707_s20, 0 }
 0x231   : > { %p1718_p11 = scmp.ge.s32.totalorder %s1376_s14, 2  ;;  %s899_s7 = scalar_lea.sflag [#allocation4], %s898_s21 }
 0x233   : > { %p1172_p0 = pnand %p1718_p11, %p1717_p12 }
 0x235   : > { %1351 = dma.done.wait (!%p1172_p0), %s899_s7, 2048  }
 0x236   : > { %1353 = vsyncadd (!%p1172_p0), %s899_s7, 4294965248  ;;  %s19_s14 = sadd.s32 1, %s1376_s14   ;;  %s1719_s9 = smov %s1360_s10 }
 0x237   : > { %p16_p5 = scmp.ge.s32.totalorder %s19_s14, 4   ;;  %s1720_s10 = smov %s1364_s11 }
 0x238   : > { %s1721_s11 = smov %s1508_s28  ;;  %s1722_s12 = smov %s1372_s13 }
 0x239   : > { %s1723_s13 = smov %s1725_s25  ;;  %18 = sbr.rel (!%p16_p5) target bundleno = 7 (0x7), region = 87 }
 0x240   :  { %904 = vsyncpa [#allocation3], 1 }
 0x241   :  { %906 = vsyncpa [#allocation3 + $0x1], 1 }
 0x242   :  { %907 = vsyncpa [#allocation6], 1 }
 0x243   :  { %908 = vsyncpa [#allocation4], 1 }
 0x244   :  { %910 = vsyncpa [#allocation4 + $0x1], 1 }

// kernel: _lambda_.3
= control target key start
LH: loop header
LB: loop body
LE: loop exit
PB: predicated region body
PF: predicated region fallthrough
CT: control target
= control target key end

     0   :  { %s1294_s0 = inlined_call_operand.hbm [shape: f32[2,4,128], index: 0, kind: input, shape index: {}]   ;;  %s1295_s1 = inlined_call_operand.hbm [shape: f32[2,8,128], index: 1, kind: input, shape index: {}]   ;;  %s1296_s2 = inlined_call_operand.hbm [shape: f32[8,4], index: 2, kind: input, shape index: {}]   ;;  %s1297_s3 = inlined_call_operand.hbm [shape: f32[8,8], index: 3, kind: input, shape index: {}]   ;;  %s1298_s4 = inlined_call_operand.hbm [shape: f32[8,1], index: 4, kind: input, shape index: {}]   ;;  %s1299_s5 = inlined_call_operand.hbm [shape: f32[2,8,128], index: 5, kind: output, shape index: {}]  }
   0x1   :  { %1304 = sst [smem:[#allocation17_spill]] %s1294_s0 }
   0x2   :  { %10 = vsyncpa [#allocation3], 0 }
   0x3   :  { %12 = vsyncpa [#allocation3 + $0x1], 0 }
   0x4   :  { %13 = vsyncpa [#allocation6], 0 }
   0x5   :  { %15 = vsyncpa [#allocation6 + $0x1], 0 }
   0x6   :  { %16 = vsyncpa [#allocation9], 0 }
   0x7   :  { %17 = vsyncpa [#allocation4], 0 }
   0x8   :  { %19 = vsyncpa [#allocation4 + $0x1], 0  ;;  %s1000_s18 = smov 0   ;;  %s1002_s19 = smov 0  }
   0x9   :  { %s1004_s20 = smov 0   ;;  %s1006_s21 = smov 0  }
   0xa LB: > { %s1021_s22 = sadd.s32 4294967295, %s959_s21   ;;  %s613_s23 = sadd.s32 4294967294, %s959_s21   ;;  %s959_s21 = sphi %s1006_s21, %s1326_s21   ;;  %s955_s20 = sphi %s1004_s20, %s1325_s20   ;;  %s951_s19 = sphi %s1002_s19, %s1324_s19   ;;  %s947_s18 = sphi %s1000_s18, %s1323_s18  }
   0xb   : > { %p45_p0 = scmp.ne.s32.totalorder %s951_s19, %s947_s18  ;;  %p1300_p1 = scmp.eq.s32.totalorder %s1021_s22, 0 }
   0xc   : > { %p164_p3 = scmp.eq.s32.totalorder %s613_s23, 1  ;;  %p614_p5 = scmp.ge.s32.totalorder %s959_s21, 1 }
   0xd   : > { %p1030_p4 = por %p1300_p1, %p45_p0  ;;  %p171_p7 = scmp.lt.s32.totalorder %s959_s21, 3 }
   0xe   : > { %p1035_p6 = por %p164_p3, %p45_p0  ;;  %s961_s27 = smov [#allocation7]  }
   0xf   : > { %s1305_s24 = scalar_select %p1030_p4, 1, 0 }
  0x10   : > { %s1306_s25 = scalar_select %p1035_p6, 1, 0 }
  0x11   : > { %p1040_p8 = pnand %p614_p5, %p171_p7  ;;  %s184_s28 = sshll.u32 %s961_s27, 4  ;;  %s185_s28 = int_to_ptr.vmem [resolvable:$true] %s184_s28 }
  0x12   : > { %s962_s29 = smov [#allocation8]   ;;  %s963_s7 = smov [#allocation10]  }
  0x13   : > { %s1307_s26 = scalar_select %p1040_p8, 1, 0 }
  0x14   : > { %p669_p10 = pneg %p1040_p8  ;;  %s195_s30 = sshll.u32 %s962_s29, 4  ;;  %s1053_s30 = int_to_ptr.vmem [resolvable:$true] %s195_s30 }
  0x15   : > { %s206_s8 = sshll.u32 %s963_s7, 4  ;;  %s737_s11 = scalar_lea.hbm %s1296_s2, 128  ;;  %s1055_s8 = int_to_ptr.vmem [resolvable:$true] %s206_s8 }
  0x16   : > { %p1049_p11 = pnand %p669_p10, %p1300_p1  ;;  %p738_p12 = scmp.ne.s32.totalorder %s1296_s2, %s737_s11 }
  0x17   : > { %p744_p5 = scmp.lt.u32.totalorder %s737_s11, %s1296_s2 }
  0x18   : > { %p1065_p13 = pneg %p1049_p11 }
  0x1a   : > { %p740_p0 = pnand %p1065_p13, %p738_p12 }
  0x1c   : > { %p741_p3 = pneg %p740_p0 }
  0x1e   : > { %p746_p7 = pnand %p744_p5, %p741_p3 }
  0x20   : > { %749 = shalt.err (!%p746_p7)
}
  0x21   : > { %s750_s17 = scalar_lea.vmem %s185_s28, 128  ;;  %p758_p2 = scmp.lt.s32.totalorder %s185_s28, %s185_s28 }
  0x22   : > { %p751_p10 = scmp.ne.s32.totalorder %s185_s28, %s750_s17  ;;  %p759_p6 = scmp.lt.s32.totalorder %s750_s17, %s750_s17 }
  0x24   : > { %p753_p9 = pnand %p751_p10, %p1065_p13  ;;  %p760_p4 = por %p759_p6, %p758_p2 }
  0x26   : > { %p754_p1 = pneg %p753_p9 }
  0x28   : > { %p761_p8 = pnand %p760_p4, %p754_p1 }
  0x2a   : > { %764 = shalt.err (!%p761_p8)
}
  0x2b   : > { %672 = dma.hbm_to_vmem [thread:$0]  (!%p1049_p11), %s1296_s2, 128, %s185_s28, [#allocation6]  }
  0x2c   : > { %s765_s9 = scalar_lea.hbm %s1297_s3, 128 }
  0x2d   : > { %p766_p9 = scmp.ne.s32.totalorder %s1297_s3, %s765_s9  ;;  %p772_p1 = scmp.lt.u32.totalorder %s765_s9, %s1297_s3 }
  0x2f   : > { %p768_p12 = pnand %p766_p9, %p1065_p13 }
  0x31   : > { %p769_p2 = pneg %p768_p12 }
  0x33   : > { %p774_p4 = pnand %p772_p1, %p769_p2 }
  0x35   : > { %777 = shalt.err (!%p774_p4)
}
  0x36   : > { %s778_s28 = scalar_lea.vmem %s1053_s30, 128  ;;  %p786_p3 = scmp.lt.s32.totalorder %s1053_s30, %s1053_s30 }
  0x37   : > { %p779_p6 = scmp.ne.s32.totalorder %s1053_s30, %s778_s28  ;;  %p787_p5 = scmp.lt.s32.totalorder %s778_s28, %s778_s28 }
  0x39   : > { %p781_p8 = pnand %p779_p6, %p1065_p13  ;;  %p788_p7 = por %p787_p5, %p786_p3 }
  0x3b   : > { %p782_p0 = pneg %p781_p8 }
  0x3d   : > { %p789_p10 = pnand %p788_p7, %p782_p0 }
  0x3f   : > { %792 = shalt.err (!%p789_p10)
}
  0x40   : > { %675 = dma.hbm_to_vmem [thread:$0]  (!%p1049_p11), %s1297_s3, 128, %s1053_s30, [#allocation9]  }
  0x41   : > { %s793_s27 = scalar_lea.hbm %s1298_s4, 128 }
  0x42   : > { %p794_p9 = scmp.ne.s32.totalorder %s1298_s4, %s793_s27  ;;  %p800_p1 = scmp.lt.u32.totalorder %s793_s27, %s1298_s4 }
  0x44   : > { %p796_p12 = pnand %p794_p9, %p1065_p13 }
  0x46   : > { %p797_p2 = pneg %p796_p12 }
  0x48   : > { %p802_p4 = pnand %p800_p1, %p797_p2 }
  0x4a   : > { %805 = shalt.err (!%p802_p4)
}
  0x4b   : > { %s806_s30 = scalar_lea.vmem %s1055_s8, 128  ;;  %p814_p3 = scmp.lt.s32.totalorder %s1055_s8, %s1055_s8 }
  0x4c   : > { %p807_p6 = scmp.ne.s32.totalorder %s1055_s8, %s806_s30  ;;  %p815_p5 = scmp.lt.s32.totalorder %s806_s30, %s806_s30 }
  0x4e   : > { %p809_p8 = pnand %p807_p6, %p1065_p13  ;;  %p816_p7 = por %p815_p5, %p814_p3 }
  0x50   : > { %p810_p0 = pneg %p809_p8 }
  0x52   : > { %p817_p10 = pnand %p816_p7, %p810_p0 }
  0x54   : > { %820 = shalt.err (!%p817_p10)
}
  0x55   : > { %678 = dma.hbm_to_vmem [thread:$0]  (!%p1049_p11), %s1298_s4, 128, %s1055_s8, [#allocation9]  }
  0x56   : > { %s1128_s14 = sadd.s32 1, %s959_s21   ;;  %s32_s13 = sadd.s32 1, %s955_s20 }
  0x57   : > { %s29_s6 = ssub.s32 %s959_s21, %s1128_s14  ;;  %p39_p9 = scmp.ne.s32.totalorder %s955_s20, %s951_s19 }
  0x58   : > { %p30_p13 = scmp.eq.s32.totalorder %s29_s6, 0  ;;  %p40_p12 = scmp.eq.s32.totalorder %s959_s21, 0 }
  0x59   : > { %p693_p2 = scmp.lt.s32.totalorder %s959_s21, 2  ;;  %p1310_p4 = scmp.eq.s32.totalorder %s1021_s22, 1 }
  0x5a   : > { %s1138_s28 = scalar_select %p30_p13, %s955_s20, %s32_s13  }
  0x5b   : > { %p41_p1 = por %p40_p12, %p39_p9  ;;  %p1142_p6 = por %p1310_p4, %p39_p9 }
  0x5c   : > { %s1147_s16 = sand.u32 1, %s955_s20   ;;  %s620_s8 = sshll.u32 %s959_s21, 6 }
  0x5d   : > { %s1311_s15 = scalar_select %p1142_p6, 1, 0 }
  0x5e   : > { %s619_s17 = sshll.u32 %s1147_s16, 2  ;;  %s1312_s0 = sld [smem:[#allocation17_spill]] }
  0x5f   : > { %s221_s7 = scalar_lea.vmem [#allocation2], %s619_s17  ;;  %p1156_p11 = pnand %p693_p2, %p41_p1 }
  0x60   : > { %s228_s9 = sshll.u32 %s221_s7, 4  ;;  %s235_s30 = sand.u32 1, %s959_s21   ;;  %s1160_s9 = int_to_ptr.vmem [resolvable:$true] %s228_s9 }
  0x61   : > { %s218_s11 = scalar_lea.sflag [#allocation3], %s1147_s16  ;;  %p823_p0 = pneg %p1156_p11 }
  0x64   : > { %s1154_s29 = scalar_lea.hbm %s1312_s0, %s620_s8  ;;  %s826_s8 = scalar_lea.hbm %s1312_s0, 128 }
  0x65   : > { %s821_s12 = scalar_lea.hbm %s1154_s29, 64  ;;  %p827_p7 = scmp.lt.u32.totalorder %s1154_s29, %s1312_s0 }
  0x66   : > { %p822_p8 = scmp.ne.s32.totalorder %s1154_s29, %s821_s12  ;;  %p828_p10 = scmp.lt.u32.totalorder %s826_s8, %s821_s12 }
  0x67   : > { %p830_p9 = scmp.lt.u32.totalorder %s821_s12, %s1154_s29 }
  0x68   : > { %p824_p3 = pnand %p823_p0, %p822_p8  ;;  %p829_p13 = por %p828_p10, %p827_p7 }
  0x6a   : > { %p825_p5 = pneg %p824_p3  ;;  %p831_p12 = por %p830_p9, %p829_p13 }
  0x6c   : > { %p832_p2 = pnand %p831_p12, %p825_p5 }
  0x6e   : > { %835 = shalt.err (!%p832_p2)
}
  0x6f   : > { %s836_s27 = scalar_lea.vmem %s1160_s9, 64  ;;  %s964_s7 = smov [#allocation2]  }
  0x70   : > { %p837_p1 = scmp.ne.s32.totalorder %s1160_s9, %s836_s27  ;;  %s841_s6 = sshll.u32 %s964_s7, 4  ;;  %s842_s6 = int_to_ptr.vmem [resolvable:$false] %s841_s6 }
  0x71   : > { %s843_s13 = scalar_lea.vmem %s842_s6, 128  ;;  %p844_p3 = scmp.lt.s32.totalorder %s1160_s9, %s842_s6 }
  0x72   : > { %p839_p4 = pnand %p837_p1, %p823_p0  ;;  %p845_p7 = scmp.lt.s32.totalorder %s843_s13, %s836_s27 }
  0x74   : > { %p840_p8 = pneg %p839_p4  ;;  %p846_p10 = por %p845_p7, %p844_p3 }
  0x76   : > { %p847_p13 = pnand %p846_p10, %p840_p8 }
  0x78   : > { %850 = shalt.err (!%p847_p13)
}
  0x79   : > { %682 = dma.hbm_to_vmem [thread:$0]  (!%p1156_p11), %s1154_s29, 64, %s1160_s9, %s218_s11  }
  0x7a   : > { %s621_s12 = sshll.u32 %s1147_s16, 3  ;;  %s622_s8 = sshll.u32 %s959_s21, 7 }
  0x7b   : > { %s1194_s7 = scalar_lea.hbm %s1295_s1, %s622_s8  ;;  %s239_s27 = scalar_lea.vmem [#allocation5], %s621_s12 }
  0x7c   : > { %s246_s6 = sshll.u32 %s239_s27, 4  ;;  %s236_s13 = scalar_lea.sflag [#allocation6], %s235_s30  ;;  %s247_s6 = int_to_ptr.vmem [resolvable:$true] %s246_s6 }
  0x7d   : > { %s851_s0 = scalar_lea.hbm %s1194_s7, 128  ;;  %s856_s9 = scalar_lea.hbm %s1295_s1, 256 }
  0x7e   : > { %p852_p5 = scmp.ne.s32.totalorder %s1194_s7, %s851_s0  ;;  %p857_p2 = scmp.lt.u32.totalorder %s1194_s7, %s1295_s1 }
  0x7f   : > { %p858_p1 = scmp.lt.u32.totalorder %s856_s9, %s851_s0  ;;  %p860_p8 = scmp.lt.u32.totalorder %s851_s0, %s1194_s7 }
  0x80   : > { %p854_p9 = pnand %p852_p5, %p823_p0 }
  0x81   : > { %p859_p4 = por %p858_p1, %p857_p2 }
  0x82   : > { %p855_p12 = pneg %p854_p9 }
  0x83   : > { %p861_p3 = por %p860_p8, %p859_p4 }
  0x85   : > { %p862_p7 = pnand %p861_p3, %p855_p12 }
  0x87   : > { %865 = shalt.err (!%p862_p7)
}
  0x88   : > { %s866_s30 = scalar_lea.vmem %s247_s6, 128  ;;  %s965_s12 = smov [#allocation5]  }
  0x89   : > { %p867_p10 = scmp.ne.s32.totalorder %s247_s6, %s866_s30  ;;  %s871_s17 = sshll.u32 %s965_s12, 4  ;;  %s872_s17 = int_to_ptr.vmem [resolvable:$false] %s871_s17 }
  0x8a   : > { %s873_s23 = scalar_lea.vmem %s872_s17, 256  ;;  %p874_p9 = scmp.lt.s32.totalorder %s247_s6, %s872_s17 }
  0x8b   : > { %p869_p13 = pnand %p867_p10, %p823_p0  ;;  %p875_p6 = scmp.lt.s32.totalorder %s873_s23, %s866_s30 }
  0x8d   : > { %p870_p5 = pneg %p869_p13  ;;  %p876_p1 = por %p875_p6, %p874_p9 }
  0x8f   : > { %p877_p2 = pnand %p876_p1, %p870_p5 }
  0x91   : > { %880 = shalt.err (!%p877_p2)
}
  0x92   : > { %685 = dma.hbm_to_vmem [thread:$0]  (!%p1156_p11), %s1194_s7, 128, %s247_s6, %s236_s13  }
  0x93   : > { %p1314_p12 = scmp.ne.s32.totalorder %s1307_s26, 0 }
  0x94   : > { %s1220_s0 = sand.u32 (!%p1314_p12), 1, %s951_s19   ;;  %p1315_p0 = scmp.ne.s32.totalorder (!%p1314_p12), %s1305_s24, 0 }
  0x95   : > { %255 = sbr.rel (%p1314_p12) target bundleno = 401 (0x191), region = 40  ;;  %s624_s27 = sshll.u32 (!%p1314_p12), %s1220_s0, 2 }
  0x96   : > { %s258_s16 = scalar_lea.sflag (!%p1314_p12), [#allocation3], %s1220_s0  ;;  %s261_s29 = scalar_lea.vmem (!%p1314_p12), [#allocation2], %s624_s27 }
  0x9c   : > { %926 = dma.done.wait (%p1315_p0), %s258_s16, 64  }
  0x9d   : > { %928 = vsyncadd (%p1315_p0), %s258_s16, 4294967232  ;;  %s266_s26 = sand.u32 1, %s1021_s22   ;;  %s625_s10 = sshll.u32 %s1220_s0, 3 }
  0x9e   : > { %s267_s7 = scalar_lea.sflag [#allocation6], %s266_s26  ;;  %s270_s6 = scalar_lea.vmem [#allocation5], %s625_s10 }
  0x9f   : > { %930 = dma.done.wait (%p1315_p0), %s267_s7, 128  }
  0xa0   : > { %932 = vsyncadd (%p1315_p0), %s267_s7, 4294967168  ;;  %p1316_p6 = scmp.eq.s32.totalorder %s1021_s22, 0 }
  0xa2   : > { %934 = dma.done.wait (%p1316_p6), [#allocation6], 128   ;;  %p1317_p11 = pmov %p1316_p6 }
  0xa3   : > { %p1318_p4 = pmov %p1316_p6 }
  0xa4   : > { %936 = vsyncadd (%p1317_p11), [#allocation6], 4294967168 }
  0xa5   : > { %938 = dma.done.wait (%p1318_p4), [#allocation9], 256   ;;  %p1319_p8 = pmov %p1318_p4 }
  0xa6   : > { %v966_v0 = vmov 0.0   ;;  %vm967_vm0 = vmmov 0   ;;  %v968_v1 = vmov 0   ;;  %vm396_vm1 = vcmask 1043456   ;;  %v317_v2 = vld [vmem:[%s270_s6] sm:$0xff]  ;;  %v316_v4 = vld [vmem:[#allocation8] sm:$0xff] }
  0xa7   : > { %940 = vsyncadd (%p1319_p8), [#allocation9], 4294967040  ;;  %641 = vmatprep.subr.mxu0 %v966_v0  ;;  %646 = vmatprep.subr.mxu1 %v966_v0  ;;  %vm318_vm2 = vcmask 64512   ;;  %vm392_vm3 = vcmask 31744   ;;  %v315_v3 = vld [vmem:[%s261_s29] sm:$0xf] }
  0xa8   : > { %643 = vmatprep.mubr.msk.f32.mxu0 %vm967_vm0, %v966_v0  ;;  %648 = vmatprep.mubr.msk.f32.mxu1 %vm967_vm0, %v966_v0  ;;  %v314_v5 = vld [vmem:[#allocation7] sm:$0xff]  ;;  %v470_v6 = vld [vmem:[#allocation10] sm:$0xff]  ;;  %s634_s24 = sshll.u32 %s1021_s22, 7  ;;  %s313_s13 = scalar_lea.vmem [#allocation11], %s625_s10 }
  0xa9   : > { %736 = vset.pattern.permute.xlu0 %v968_v1  ;;  %642 = vmatpush3.msra.mxu0 %v317_v2  ;;  %s492_s9 = sshll.u32 %s313_s13, 4  ;;  %s1250_s30 = scalar_lea.hbm %s1299_s5, %s634_s24  ;;  %s1252_s9 = int_to_ptr.vmem [resolvable:$true] %s492_s9 }
  0xaa   : > { %647 = vmatpush3.msk.msra.mxu1 %vm396_vm1, %v315_v3  ;;  %644 = vmatmul.mubr.msk.f32.vlgmr.msra.gmra.mrb[0].mxu0 %vm318_vm2, %v316_v4  ;;  %s479_s12 = scalar_lea.sflag [#allocation4], %s1220_s0  ;;  %s881_s22 = scalar_lea.vmem %s1252_s9, 128 }
  0xab   : > { %649 = vmatmul.mubr.msk.f32.vlgmr.msra.gmra.mrb[0].mxu1 %vm392_vm3, %v314_v5  ;;  %473 = vperm.xlu0 %736, %v470_v6   ;;  %p882_p3 = scmp.ne.s32.totalorder %s1252_s9, %s881_s22  ;;  %p1320_p7 = scmp.ne.s32.totalorder %s1311_s15, 0 }
  0xac   : > { %s969_s17 = smov [#allocation11]  }
  0xad   : > { %p883_p10 = pnand %p882_p3, %p1320_p7  ;;  %s885_s23 = sshll.u32 %s969_s17, 4  ;;  %s886_s23 = int_to_ptr.vmem [resolvable:$false] %s885_s23 }
  0xae   : > { %s887_s27 = scalar_lea.vmem %s886_s23, 256  ;;  %p888_p5 = scmp.lt.s32.totalorder %s1252_s9, %s886_s23 }
  0xaf   : > { %p884_p13 = pneg %p883_p10  ;;  %p889_p9 = scmp.lt.s32.totalorder %s887_s27, %s881_s22 }
  0xb1   : > { %p890_p1 = por %p889_p9, %p888_p5 }
  0xb3   : > { %p891_p2 = pnand %p890_p1, %p884_p13 }
 0x12a   : > { %v474_v7 = vpop.permute.xlu0 %473 }
 0x17d   : > { %v388_v8 = vpop.f32.mrb[0].mxu0 }
 0x17e   : > { %v466_v9 = vpop.f32.mrb[0].mxu1  ;;  %v645_v11 = vpop.f32.mrb[1].mxu0 }
 0x17f   : > { %v467_v10 = vadd.f32 %v466_v9, %v388_v8  ;;  %v650_v12 = vpop.f32.mrb[1].mxu1 }
 0x181   : > { %v476_v13 = vadd.f32 %v474_v7, %v467_v10 }
 0x183   : > { %477 = vst [vmem:[%s313_s13] sm:$0xff] %v476_v13 }
 0x184   : > { %894 = shalt.err (!%p891_p2)
}
 0x185   : > { %s895_s0 = scalar_lea.hbm %s1250_s30, 128  ;;  %s899_s26 = scalar_lea.hbm %s1299_s5, 256 }
 0x186   : > { %p896_p12 = scmp.ne.s32.totalorder %s1250_s30, %s895_s0  ;;  %p900_p11 = scmp.lt.u32.totalorder %s1250_s30, %s1299_s5 }
 0x187   : > { %p901_p4 = scmp.lt.u32.totalorder %s899_s26, %s895_s0  ;;  %p903_p3 = scmp.lt.u32.totalorder %s895_s0, %s1250_s30 }
 0x188   : > { %p897_p0 = pnand %p896_p12, %p1320_p7 }
 0x189   : > { %p902_p8 = por %p901_p4, %p900_p11 }
 0x18a   : > { %p898_p6 = pneg %p897_p0 }
 0x18b   : > { %p904_p10 = por %p903_p3, %p902_p8 }
 0x18d   : > { %p905_p13 = pnand %p904_p10, %p898_p6 }
 0x18f   : > { %908 = shalt.err (!%p905_p13)
}
 0x190   : > { %667 = dma.vmem_to_hbm [thread:$0]  (%p1320_p7), %s1252_s9, 128, %s1250_s30, %s479_s12  }
 0x191 PF: > { %s504_s6 = sand.u32 1, %s947_s18   ;;  %p1321_p5 = scmp.ne.s32.totalorder %s1306_s25, 0 }
 0x192   : > { %p1322_p9 = scmp.ge.s32.totalorder %s959_s21, 2  ;;  %s505_s24 = scalar_lea.sflag [#allocation4], %s504_s6 }
 0x194   : > { %p687_p1 = pnand %p1322_p9, %p1321_p5 }
 0x196   : > { %942 = dma.done.wait (!%p687_p1), %s505_s24, 128  }
 0x197   : > { %944 = vsyncadd (!%p687_p1), %s505_s24, 4294967168  ;;  %p22_p2 = scmp.ge.s32.totalorder %s1128_s14, 4   ;;  %s1323_s18 = smov %s951_s19 }
 0x198   : > { %s1324_s19 = smov %s955_s20  ;;  %s1325_s20 = smov %s1138_s28 }
 0x199   : > { %s1326_s21 = smov %s1128_s14  ;;  %24 = sbr.rel (!%p22_p2) target bundleno = 10 (0xa), region = 110 }
 0x1a0   :  { %510 = vsyncpa [#allocation3], 1 }
 0x1a1   :  { %512 = vsyncpa [#allocation3 + $0x1], 1 }
 0x1a2   :  { %513 = vsyncpa [#allocation6], 1 }
 0x1a3   :  { %515 = vsyncpa [#allocation6 + $0x1], 1 }
 0x1a4   :  { %516 = vsyncpa [#allocation9], 1 }
 0x1a5   :  { %517 = vsyncpa [#allocation4], 1 }
 0x1a6   :  { %519 = vsyncpa [#allocation4 + $0x1], 1 }

</bundles_post_ra>
